<compile_context>
chip_gen: v7x
topology: tpu7x:2x2x1
jax: 0.10.0
libtpu: 0.0.40
codegen_flags: <defaults>
</compile_context>

<pallas_src>
import math
import functools

import jax
import jax.numpy as jnp
from jax import lax
from jax.experimental import pallas as pl
from jax.experimental.pallas import tpu as pltpu


def transformer_fusion_kernel(x_ref, w_qkv_ref, b_qkv_ref, w_o_out_ref, b_o_out_ref,
                              rep_mask_ref, sum_blocks_ref, batch_bias_ref, o_ref,
                              *, num_heads, d_model):
    x = x_ref[...].astype(jnp.float32)                                   # (B*S, Din)

    # Fused proj_in + MHA in-projection (attention scale already folded into Q columns).
    qkv = jnp.dot(x, w_qkv_ref[...], preferred_element_type=jnp.float32) + b_qkv_ref[...]
    q = qkv[:, :d_model]                                                 # (B*S, d_model), pre-scaled
    kv = qkv[:, d_model:]                                                # (B*S, 2*d_model)

    # Single sublane replication for both K and V, then mask into block-diagonal
    # (head-packed) form. Row order of the packed matrices is (head, batch, time):
    #   r = h*(B*S) + b*S + t.
    kv_rep = jnp.concatenate([kv] * num_heads, axis=0)                   # (H*B*S, 2*d_model)
    rep_mask = rep_mask_ref[...]                                         # (H*B*S, d_model)
    k_bd = kv_rep[:, :d_model] * rep_mask
    v_bd = kv_rep[:, d_model:] * rep_mask

    # All-head scores in one matmul; contract the last dims (no explicit transpose op).
    #   scores[i, r] = sum_{d in head h(r)} q_scaled[i, d] * k[b(r)*S + t(r), d]
    scores = lax.dot_general(q, k_bd, (((1,), (1,)), ((), ())),
                             preferred_element_type=jnp.float32)         # (B*S, H*B*S)
    # Forbid cross-batch attention (additive -1e9 on mismatched batch columns).
    scores = scores + batch_bias_ref[...]

    # Per-(batch, head) softmax over column groups of size S, using a global row max.
    # Any per-row shift is algebraically valid (it cancels in each group's normalization);
    # note: if one head's scores sat ~88+ below the row max its exp would underflow —
    # irrelevant at these magnitudes.
    m = jnp.max(scores, axis=-1, keepdims=True)
    e = jnp.exp(scores - m)                                              # cross-batch entries -> 0
    # Per-head denominators broadcast back to all columns via one block-indicator matmul.
    # Grouping is by head only; cross-batch contributions are already exactly zero.
    denom = jnp.dot(e, sum_blocks_ref[...], preferred_element_type=jnp.float32)
    p = e / denom                                                        # exact reciprocal

    # context = p @ v_bd is exactly the concatenated per-head attention output (v_bd is
    # block-diagonal), so both remaining matmuls run with M = B*S rows only.
    context = jnp.dot(p, v_bd, preferred_element_type=jnp.float32)       # (B*S, d_model)
    logits = jnp.dot(context, w_o_out_ref[...],
                     preferred_element_type=jnp.float32) + b_o_out_ref[...]  # (B*S, Dpad)

    o_ref[...] = jax.nn.sigmoid(logits).astype(o_ref.dtype)              # lane-dense full store


def transformer_fusion(x, params, *, num_heads):
    B, S, Din = x.shape
    d_model = params["w_in"].shape[0]
    dh = d_model // num_heads
    d_pad = ((Din + 127) // 128) * 128                                   # lane-dense output width
    BS = B * S
    BHS = num_heads * BS
    f32 = jnp.float32

    # --- Host-side algebraic fusions -------------------------------------------------
    # proj_in folded into the QKV in-projection.
    w_in_t = params["w_in"].T.astype(f32)                                # (Din, d_model)
    w_qkv_t = params["w_qkv"].T.astype(f32)                              # (d_model, 3*d_model)
    w_qkv_fused = jnp.dot(w_in_t, w_qkv_t)                               # (Din, 3*d_model)
    b_qkv_fused = jnp.dot(params["b_in"].astype(f32), w_qkv_t) + params["b_qkv"].astype(f32)

    # Fold the attention scale into the Q columns.
    scale = 1.0 / math.sqrt(dh)
    col_scale = jnp.concatenate([jnp.full((d_model,), scale, f32),
                                 jnp.ones((2 * d_model,), f32)])
    w_qkv_fused = w_qkv_fused * col_scale[None, :]
    b_qkv_fused = (b_qkv_fused * col_scale).reshape(1, 3 * d_model)

    # MHA out_proj folded into proj_out, zero-padded to a multiple of 128 output lanes.
    w_out_t = params["w_out"].T.astype(f32)                              # (d_model, Din)
    w_o_out = jnp.dot(params["w_o"].T.astype(f32), w_out_t)              # (d_model, Din)
    b_o_out = jnp.dot(params["b_o"].astype(f32), w_out_t) + params["b_out"].astype(f32)
    w_o_out_pad = jnp.zeros((d_model, d_pad), f32).at[:, :Din].set(w_o_out)
    b_o_out_pad = jnp.zeros((1, d_pad), f32).at[0, :Din].set(b_o_out)

    # Host-built constant masks (grid-invariant; fetched once, stay resident in VMEM).
    # Packed K/V row order is (head, batch, time): r = h*(B*S) + b*S + t.
    row = jnp.arange(BHS)
    head_of_row = row // BS
    batch_of_row = (row % BS) // S
    col = jnp.arange(d_model)
    head_of_col = col // dh
    rep_mask = (head_of_row[:, None] == head_of_col[None, :]).astype(f32)     # (BHS, d_model)
    sum_blocks = (head_of_row[:, None] == head_of_row[None, :]).astype(f32)   # (BHS, BHS)
    batch_of_q = jnp.arange(BS) // S
    batch_bias = jnp.where(batch_of_q[:, None] == batch_of_row[None, :],
                           0.0, -1e9).astype(f32)                             # (BS, BHS)
    # ----------------------------------------------------------------------------------

    x_flat = x.reshape(BS, Din)

    kernel = functools.partial(transformer_fusion_kernel,
                               num_heads=num_heads, d_model=d_model)

    def full_spec(shape):
        return pl.BlockSpec(shape, lambda i: (0,) * len(shape))

    inputs = (x_flat, w_qkv_fused, b_qkv_fused, w_o_out_pad, b_o_out_pad,
              rep_mask, sum_blocks, batch_bias)

    out_flat = pl.pallas_call(
        kernel,
        out_shape=jax.ShapeDtypeStruct((BS, d_pad), x.dtype),
        grid_spec=pltpu.PrefetchScalarGridSpec(
            num_scalar_prefetch=0,
            grid=(1,),                                                    # single step: whole batch at once
            in_specs=[full_spec(a.shape) for a in inputs],
            out_specs=full_spec((BS, d_pad)),
        ),
        compiler_params=pltpu.CompilerParams(dimension_semantics=("arbitrary",)),
    )(*inputs)

    return out_flat.reshape(B, S, d_pad)[:, :, :Din]


def transformer_fusion_ref(x, params, *, num_heads):
    """Pure-JAX reference mirroring PyTorch semantics (unfused weights, exact softmax)."""
    d_model = params["w_in"].shape[0]
    dh = d_model // num_heads
    proj_x = jnp.einsum("bsi,di->bsd", x, params["w_in"]) + params["b_in"]
    qkv = jnp.einsum("bsd,ed->bse", proj_x, params["w_qkv"]) + params["b_qkv"]
    q, k, v = jnp.split(qkv, 3, axis=-1)
    B, S, _ = q.shape
    q = q.reshape(B, S, num_heads, dh).transpose(0, 2, 1, 3)
    k = k.reshape(B, S, num_heads, dh).transpose(0, 2, 1, 3)
    v = v.reshape(B, S, num_heads, dh).transpose(0, 2, 1, 3)
    s = jnp.einsum("bhqd,bhkd->bhqk", q, k) / math.sqrt(dh)
    p = jax.nn.softmax(s, axis=-1)
    o = jnp.einsum("bhqk,bhkd->bhqd", p, v).transpose(0, 2, 1, 3).reshape(B, S, d_model)
    attn_out = jnp.einsum("bsd,ed->bse", o, params["w_o"]) + params["b_o"]
    logits = jnp.einsum("bsd,id->bsi", attn_out, params["w_out"]) + params["b_out"]
    return jax.nn.sigmoid(logits)


if __name__ == "__main__":
    # Small shapes consistent with the module: batch=2, seq=8, input_dim=32,
    # d_model=128 (module default), num_heads=8 (module default).
    B, S, Din = 2, 8, 32
    d_model, num_heads = 128, 8

    key = jax.random.PRNGKey(0)
    ks = jax.random.split(key, 9)
    params = {
        "w_in":  0.05 * jax.random.normal(ks[0], (d_model, Din), jnp.float32),
        "b_in":  0.05 * jax.random.normal(ks[1], (d_model,), jnp.float32),
        "w_qkv": 0.05 * jax.random.normal(ks[2], (3 * d_model, d_model), jnp.float32),
        "b_qkv": 0.05 * jax.random.normal(ks[3], (3 * d_model,), jnp.float32),
        "w_o":   0.05 * jax.random.normal(ks[4], (d_model, d_model), jnp.float32),
        "b_o":   0.05 * jax.random.normal(ks[5], (d_model,), jnp.float32),
        "w_out": 0.05 * jax.random.normal(ks[6], (Din, d_model), jnp.float32),
        "b_out": 0.05 * jax.random.normal(ks[7], (Din,), jnp.float32),
    }
    x = jax.random.normal(ks[8], (B, S, Din), jnp.float32)

    out = transformer_fusion(x, params, num_heads=num_heads)
    out = jax.block_until_ready(out)

    ref = transformer_fusion_ref(x, params, num_heads=num_heads)
    assert out.shape == (B, S, Din)
    assert jnp.max(jnp.abs(out - ref)) < 1e-4, "mismatch vs pure-JAX reference"

    print("KERNEL_OK")
</pallas_src>

<mosaic_0001>
module attributes {stable_mosaic.version = 11 : i64} {
  func.func @transformer_fusion_kernel(%arg0: i32, %arg1: memref<16x32xf32, #tpu.memory_space<vmem>>, %arg2: memref<32x384xf32, #tpu.memory_space<vmem>>, %arg3: memref<1x384xf32, #tpu.memory_space<vmem>>, %arg4: memref<128x128xf32, #tpu.memory_space<vmem>>, %arg5: memref<1x128xf32, #tpu.memory_space<vmem>>, %arg6: memref<128x128xf32, #tpu.memory_space<vmem>>, %arg7: memref<128x128xf32, #tpu.memory_space<vmem>>, %arg8: memref<16x128xf32, #tpu.memory_space<vmem>>, %arg9: memref<16x128xf32, #tpu.memory_space<vmem>>) attributes {dimension_semantics = [#tpu.dimension_semantics<arbitrary>], iteration_bounds = array<i64: 1>, scalar_prefetch = 0 : i64, scratch_operands = 0 : i64, tpu.core_type = #tpu.core_type<tc>, window_params = [{pipeline_mode = #tpu.pipeline_mode<synchronous>, transform_indices = @transform_0, window_bounds = array<i64: 16, 32>}, {pipeline_mode = #tpu.pipeline_mode<synchronous>, transform_indices = @transform_1, window_bounds = array<i64: 32, 384>}, {pipeline_mode = #tpu.pipeline_mode<synchronous>, transform_indices = @transform_2, window_bounds = array<i64: 1, 384>}, {pipeline_mode = #tpu.pipeline_mode<synchronous>, transform_indices = @transform_3, window_bounds = array<i64: 128, 128>}, {pipeline_mode = #tpu.pipeline_mode<synchronous>, transform_indices = @transform_4, window_bounds = array<i64: 1, 128>}, {pipeline_mode = #tpu.pipeline_mode<synchronous>, transform_indices = @transform_5, window_bounds = array<i64: 128, 128>}, {pipeline_mode = #tpu.pipeline_mode<synchronous>, transform_indices = @transform_6, window_bounds = array<i64: 128, 128>}, {pipeline_mode = #tpu.pipeline_mode<synchronous>, transform_indices = @transform_7, window_bounds = array<i64: 16, 128>}, {pipeline_mode = #tpu.pipeline_mode<synchronous>, transform_indices = @transform_8, window_bounds = array<i64: 16, 128>}]} {
    %c0 = arith.constant 0 : index
    %c0_0 = arith.constant 0 : index
    %0 = vector.load %arg1[%c0, %c0_0] : memref<16x32xf32, #tpu.memory_space<vmem>>, vector<16x32xf32>
    %c0_1 = arith.constant 0 : index
    %c0_2 = arith.constant 0 : index
    %1 = vector.load %arg2[%c0_1, %c0_2] : memref<32x384xf32, #tpu.memory_space<vmem>>, vector<32x384xf32>
    %cst = arith.constant dense<0.000000e+00> : vector<16x384xf32>
    %2 = tpu.matmul %0, %1, %cst {dimension_numbers = #tpu.dot_dimension_numbers<[1], [0], [0], [1], [0, 0, 1, 1], [], []>} : vector<16x32xf32>, vector<32x384xf32>, vector<16x384xf32> -> vector<16x384xf32>
    %c0_3 = arith.constant 0 : index
    %c0_4 = arith.constant 0 : index
    %3 = vector.load %arg3[%c0_3, %c0_4] : memref<1x384xf32, #tpu.memory_space<vmem>>, vector<1x384xf32>
    %4 = vector.broadcast %3 : vector<1x384xf32> to vector<16x384xf32>
    %5 = arith.addf %2, %4 : vector<16x384xf32>
    %6 = vector.extract_strided_slice %5 {offsets = [0, 0], sizes = [16, 128], strides = [1, 1]} : vector<16x384xf32> to vector<16x128xf32>
    %7 = vector.extract_strided_slice %5 {offsets = [0, 128], sizes = [16, 256], strides = [1, 1]} : vector<16x384xf32> to vector<16x256xf32>
    %8 = tpu.concatenate %7, %7, %7, %7, %7, %7, %7, %7 in 0 : vector<16x256xf32>, vector<16x256xf32>, vector<16x256xf32>, vector<16x256xf32>, vector<16x256xf32>, vector<16x256xf32>, vector<16x256xf32>, vector<16x256xf32> -> vector<128x256xf32>
    %c0_5 = arith.constant 0 : index
    %c0_6 = arith.constant 0 : index
    %9 = vector.load %arg6[%c0_5, %c0_6] : memref<128x128xf32, #tpu.memory_space<vmem>>, vector<128x128xf32>
    %10 = vector.extract_strided_slice %8 {offsets = [0, 0], sizes = [128, 128], strides = [1, 1]} : vector<128x256xf32> to vector<128x128xf32>
    %11 = arith.mulf %10, %9 : vector<128x128xf32>
    %12 = vector.extract_strided_slice %8 {offsets = [0, 128], sizes = [128, 128], strides = [1, 1]} : vector<128x256xf32> to vector<128x128xf32>
    %13 = arith.mulf %12, %9 : vector<128x128xf32>
    %cst_7 = arith.constant dense<0.000000e+00> : vector<16x128xf32>
    %14 = tpu.matmul %6, %11, %cst_7 {dimension_numbers = #tpu.dot_dimension_numbers<[1], [1], [0], [0], [0, 0, 1, 0], [], []>} : vector<16x128xf32>, vector<128x128xf32>, vector<16x128xf32> -> vector<16x128xf32>
    %c0_8 = arith.constant 0 : index
    %c0_9 = arith.constant 0 : index
    %15 = vector.load %arg8[%c0_8, %c0_9] : memref<16x128xf32, #tpu.memory_space<vmem>>, vector<16x128xf32>
    %16 = arith.addf %14, %15 : vector<16x128xf32>
    %cst_10 = arith.constant dense<0xFF800000> : vector<16xf32>
    %17 = vector.multi_reduction <maximumf>, %16, %cst_10 [1] : vector<16x128xf32> to vector<16xf32>
    %18 = vector.shape_cast %17 : vector<16xf32> to vector<16x1xf32>
    %19 = vector.broadcast %18 : vector<16x1xf32> to vector<16x128xf32>
    %20 = arith.subf %16, %19 : vector<16x128xf32>
    %21 = math.exp %20 : vector<16x128xf32>
    %c0_11 = arith.constant 0 : index
    %c0_12 = arith.constant 0 : index
    %22 = vector.load %arg7[%c0_11, %c0_12] : memref<128x128xf32, #tpu.memory_space<vmem>>, vector<128x128xf32>
    %cst_13 = arith.constant dense<0.000000e+00> : vector<16x128xf32>
    %23 = tpu.matmul %21, %22, %cst_13 {dimension_numbers = #tpu.dot_dimension_numbers<[1], [0], [0], [1], [0, 0, 1, 1], [], []>} : vector<16x128xf32>, vector<128x128xf32>, vector<16x128xf32> -> vector<16x128xf32>
    %24 = arith.divf %21, %23 : vector<16x128xf32>
    %cst_14 = arith.constant dense<0.000000e+00> : vector<16x128xf32>
    %25 = tpu.matmul %24, %13, %cst_14 {dimension_numbers = #tpu.dot_dimension_numbers<[1], [0], [0], [1], [0, 0, 1, 1], [], []>} : vector<16x128xf32>, vector<128x128xf32>, vector<16x128xf32> -> vector<16x128xf32>
    %c0_15 = arith.constant 0 : index
    %c0_16 = arith.constant 0 : index
    %26 = vector.load %arg4[%c0_15, %c0_16] : memref<128x128xf32, #tpu.memory_space<vmem>>, vector<128x128xf32>
    %cst_17 = arith.constant dense<0.000000e+00> : vector<16x128xf32>
    %27 = tpu.matmul %25, %26, %cst_17 {dimension_numbers = #tpu.dot_dimension_numbers<[1], [0], [0], [1], [0, 0, 1, 1], [], []>} : vector<16x128xf32>, vector<128x128xf32>, vector<16x128xf32> -> vector<16x128xf32>
    %c0_18 = arith.constant 0 : index
    %c0_19 = arith.constant 0 : index
    %28 = vector.load %arg5[%c0_18, %c0_19] : memref<1x128xf32, #tpu.memory_space<vmem>>, vector<1x128xf32>
    %29 = vector.broadcast %28 : vector<1x128xf32> to vector<16x128xf32>
    %30 = arith.addf %27, %29 : vector<16x128xf32>
    %31 = arith.negf %30 : vector<16x128xf32>
    %32 = math.exp %31 : vector<16x128xf32>
    %cst_20 = arith.constant 1.000000e+00 : f32
    %33 = vector.broadcast %cst_20 : f32 to vector<16x128xf32>
    %34 = arith.addf %33, %32 : vector<16x128xf32>
    %35 = arith.divf %33, %34 : vector<16x128xf32>
    %c0_21 = arith.constant 0 : index
    %c0_22 = arith.constant 0 : index
    %36 = vector.load %arg9[%c0_21, %c0_22] : memref<16x128xf32, #tpu.memory_space<vmem>>, vector<16x128xf32>
    tpu.vector_store %arg9[%c0_21, %c0_22], %35 {strides = array<i32>} : memref<16x128xf32, #tpu.memory_space<vmem>>, vector<16x128xf32>,
    return
  }
  func.func @transform_0(%arg0: i32) -> (i32, i32) {
    %c0_i32 = arith.constant 0 : i32
    %c0_i32_0 = arith.constant 0 : i32
    %c0_i32_1 = arith.constant 0 : i32
    return %c0_i32, %c0_i32_0 : i32, i32
  }
  func.func @transform_1(%arg0: i32) -> (i32, i32) {
    %c0_i32 = arith.constant 0 : i32
    %c0_i32_0 = arith.constant 0 : i32
    %c0_i32_1 = arith.constant 0 : i32
    return %c0_i32, %c0_i32_0 : i32, i32
  }
  func.func @transform_2(%arg0: i32) -> (i32, i32) {
    %c0_i32 = arith.constant 0 : i32
    %c0_i32_0 = arith.constant 0 : i32
    %c0_i32_1 = arith.constant 0 : i32
    return %c0_i32, %c0_i32_0 : i32, i32
  }
  func.func @transform_3(%arg0: i32) -> (i32, i32) {
    %c0_i32 = arith.constant 0 : i32
    %c0_i32_0 = arith.constant 0 : i32
    %c0_i32_1 = arith.constant 0 : i32
    return %c0_i32, %c0_i32_0 : i32, i32
  }
  func.func @transform_4(%arg0: i32) -> (i32, i32) {
    %c0_i32 = arith.constant 0 : i32
    %c0_i32_0 = arith.constant 0 : i32
    %c0_i32_1 = arith.constant 0 : i32
    return %c0_i32, %c0_i32_0 : i32, i32
  }
  func.func @transform_5(%arg0: i32) -> (i32, i32) {
    %c0_i32 = arith.constant 0 : i32
    %c0_i32_0 = arith.constant 0 : i32
    %c0_i32_1 = arith.constant 0 : i32
    return %c0_i32, %c0_i32_0 : i32, i32
  }
  func.func @transform_6(%arg0: i32) -> (i32, i32) {
    %c0_i32 = arith.constant 0 : i32
    %c0_i32_0 = arith.constant 0 : i32
    %c0_i32_1 = arith.constant 0 : i32
    return %c0_i32, %c0_i32_0 : i32, i32
  }
  func.func @transform_7(%arg0: i32) -> (i32, i32) {
    %c0_i32 = arith.constant 0 : i32
    %c0_i32_0 = arith.constant 0 : i32
    %c0_i32_1 = arith.constant 0 : i32
    return %c0_i32, %c0_i32_0 : i32, i32
  }
  func.func @transform_8(%arg0: i32) -> (i32, i32) {
    %c0_i32 = arith.constant 0 : i32
    %c0_i32_0 = arith.constant 0 : i32
    %c0_i32_1 = arith.constant 0 : i32
    return %c0_i32, %c0_i32_0 : i32, i32
  }
}

</mosaic_0001>

<bundles_post_ra>
// kernel: tpu_custom_call.1
= control target key start
LH: loop header
LB: loop body
LE: loop exit
PB: predicated region body
PF: predicated region fallthrough
CT: control target
= control target key end

     0   :  { %13 = vsyncpa [#allocation3], 0  ;;  %s1516_s0 = inlined_call_operand.hbm [shape: f32[16,32], index: 0, kind: input, shape index: {}]   ;;  %s1517_s1 = inlined_call_operand.hbm [shape: f32[32,384], index: 1, kind: input, shape index: {}]   ;;  %s1518_s2 = inlined_call_operand.vmem [shape: f32[1,384], index: 2, kind: input, shape index: {}]   ;;  %s1519_s3 = inlined_call_operand.hbm [shape: f32[128,128], index: 3, kind: input, shape index: {}]   ;;  %s1520_s4 = inlined_call_operand.vmem [shape: f32[1,128], index: 4, kind: input, shape index: {}]   ;;  %s1521_s5 = inlined_call_operand.hbm [shape: f32[128,128], index: 5, kind: input, shape index: {}]   ;;  %s1522_s6 = inlined_call_operand.hbm [shape: f32[128,128], index: 6, kind: input, shape index: {}]   ;;  %s1523_s7 = inlined_call_operand.vmem [shape: f32[16,128], index: 7, kind: input, shape index: {}]   ;;  %s1524_s8 = inlined_call_operand.hbm [shape: f32[16,128], index: 8, kind: output, shape index: {}]  }
   0x1   :  { %14 = vsyncpa [#allocation6], 0 }
   0x2   :  { %15 = vsyncpa [#allocation9], 0 }
   0x3   :  { %16 = vsyncpa [#allocation4], 0  ;;  %s1271_s27 = smov [#allocation5]   ;;  %s1131_s9 = scalar_lea.hbm %s1517_s1, 1536 }
   0x4   :  { %s34_s28 = sshll.u32 %s1271_s27, 4  ;;  %p1132_p0 = scmp.ne.s32.totalorder %s1517_s1, %s1131_s9  ;;  %s35_s28 = int_to_ptr.vmem [resolvable:$true] %s34_s28 }
   0x5   :  { %p1135_p1 = scmp.lt.u32.totalorder %s1131_s9, %s1517_s1 }
   0x7   :  { %p1137_p2 = pnand %p1135_p1, %p1132_p0 }
   0x9   :  { %1140 = shalt.err (!%p1137_p2)
}
   0xa   :  { %s1141_s14 = scalar_lea.vmem %s35_s28, 1536  ;;  %p1146_p4 = scmp.lt.s32.totalorder %s35_s28, %s35_s28 }
   0xb   :  { %p1142_p3 = scmp.ne.s32.totalorder %s35_s28, %s1141_s14  ;;  %p1147_p5 = scmp.lt.s32.totalorder %s1141_s14, %s1141_s14 }
   0xd   :  { %p1148_p6 = por %p1147_p5, %p1146_p4 }
   0xf   :  { %p1149_p7 = pnand %p1148_p6, %p1142_p3 }
  0x11   :  { %1152 = shalt.err (!%p1149_p7)
}
  0x12   :  { %s1272_s15 = smov 384   ;;  %s1273_s16 = smov 24  }
  0x13   :  { %40 = dma.hbm_to_vmem [thread:$0]  %s1517_s1, 1536, %s35_s28, [#allocation6], %s1272_s15, %s1272_s15, %s1273_s16  }
  0x14   :  { %s1274_s19 = smov [#allocation8]   ;;  %s1275_s21 = smov [#allocation2]  }
  0x15   :  { %s62_s20 = sshll.u32 %s1274_s19, 4  ;;  %s22_s22 = sshll.u32 %s1275_s21, 4  ;;  %s63_s20 = int_to_ptr.vmem [resolvable:$true] %s62_s20  ;;  %s23_s22 = int_to_ptr.vmem [resolvable:$true] %s22_s22 }
  0x16   :  { %s1153_s25 = scalar_lea.hbm %s1521_s5, 2048 }
  0x17   :  { %p1154_p8 = scmp.ne.s32.totalorder %s1521_s5, %s1153_s25  ;;  %p1157_p9 = scmp.lt.u32.totalorder %s1153_s25, %s1521_s5 }
  0x19   :  { %p1159_p10 = pnand %p1157_p9, %p1154_p8 }
  0x1b   :  { %1162 = shalt.err (!%p1159_p10)
}
  0x1c   :  { %s1163_s1 = scalar_lea.vmem %s63_s20, 2048  ;;  %p1168_p12 = scmp.lt.s32.totalorder %s63_s20, %s63_s20 }
  0x1d   :  { %p1164_p11 = scmp.ne.s32.totalorder %s63_s20, %s1163_s1  ;;  %p1169_p13 = scmp.lt.s32.totalorder %s1163_s1, %s1163_s1 }
  0x1f   :  { %p1170_p0 = por %p1169_p13, %p1168_p12 }
  0x21   :  { %p1171_p1 = pnand %p1170_p0, %p1164_p11 }
  0x23   :  { %1174 = shalt.err (!%p1171_p1)
}
  0x24   :  { %s1276_s28 = smov 128   ;;  %s1277_s9 = smov 8  }
  0x25   :  { %68 = dma.hbm_to_vmem [thread:$0]  %s1521_s5, 2048, %s63_s20, [#allocation9], %s1276_s28, %s1276_s28, %s1277_s9  }
  0x26   :  { %s1175_s14 = scalar_lea.hbm %s1516_s0, 256 }
  0x27   :  { %p1176_p2 = scmp.ne.s32.totalorder %s1516_s0, %s1175_s14  ;;  %p1179_p3 = scmp.lt.u32.totalorder %s1175_s14, %s1516_s0 }
  0x29   :  { %p1181_p4 = pnand %p1179_p3, %p1176_p2 }
  0x2b   :  { %1184 = shalt.err (!%p1181_p4)
}
  0x2c   :  { %s1185_s19 = scalar_lea.vmem %s23_s22, 256  ;;  %p1190_p6 = scmp.lt.s32.totalorder %s23_s22, %s23_s22 }
  0x2d   :  { %p1186_p5 = scmp.ne.s32.totalorder %s23_s22, %s1185_s19  ;;  %p1191_p7 = scmp.lt.s32.totalorder %s1185_s19, %s1185_s19 }
  0x2f   :  { %p1192_p8 = por %p1191_p7, %p1190_p6 }
  0x31   :  { %p1193_p9 = pnand %p1192_p8, %p1186_p5 }
  0x33   :  { %1196 = shalt.err (!%p1193_p9)
}
  0x34   :  { %28 = dma.hbm_to_vmem [thread:$0]  %s1516_s0, 256, %s23_s22, [#allocation3], %s1276_s28, %s1276_s28, %s1277_s9  }
  0x35   :  { %s1278_s21 = smov [#allocation7]   ;;  %s1279_s24 = smov [#allocation10]  }
  0x36   :  { %s48_s23 = sshll.u32 %s1278_s21, 4  ;;  %s74_s25 = sshll.u32 %s1279_s24, 4  ;;  %s49_s23 = int_to_ptr.vmem [resolvable:$true] %s48_s23  ;;  %s75_s25 = int_to_ptr.vmem [resolvable:$true] %s74_s25 }
  0x37   :  { %s1197_s29 = scalar_lea.hbm %s1519_s3, 2048 }
  0x38   :  { %p1198_p10 = scmp.ne.s32.totalorder %s1519_s3, %s1197_s29  ;;  %p1201_p11 = scmp.lt.u32.totalorder %s1197_s29, %s1519_s3 }
  0x3a   :  { %p1203_p12 = pnand %p1201_p11, %p1198_p10 }
  0x3c   :  { %1206 = shalt.err (!%p1203_p12)
}
  0x3d   :  { %s1207_s0 = scalar_lea.vmem %s49_s23, 2048  ;;  %p1212_p0 = scmp.lt.s32.totalorder %s49_s23, %s49_s23 }
  0x3e   :  { %p1208_p13 = scmp.ne.s32.totalorder %s49_s23, %s1207_s0  ;;  %p1213_p1 = scmp.lt.s32.totalorder %s1207_s0, %s1207_s0 }
  0x40   :  { %p1214_p2 = por %p1213_p1, %p1212_p0 }
  0x42   :  { %p1215_p3 = pnand %p1214_p2, %p1208_p13 }
  0x44   :  { %1218 = shalt.err (!%p1215_p3)
}
  0x45   :  { %54 = dma.hbm_to_vmem [thread:$0]  %s1519_s3, 2048, %s49_s23, [#allocation6], %s1276_s28, %s1276_s28, %s1277_s9  }
  0x46   :  { %s1219_s15 = scalar_lea.hbm %s1522_s6, 2048 }
  0x47   :  { %p1220_p4 = scmp.ne.s32.totalorder %s1522_s6, %s1219_s15  ;;  %p1223_p5 = scmp.lt.u32.totalorder %s1219_s15, %s1522_s6 }
  0x49   :  { %p1225_p6 = pnand %p1223_p5, %p1220_p4 }
  0x4b   :  { %1228 = shalt.err (!%p1225_p6)
}
  0x4c   :  { %s1229_s5 = scalar_lea.vmem %s75_s25, 2048  ;;  %p1234_p8 = scmp.lt.s32.totalorder %s75_s25, %s75_s25 }
  0x4d   :  { %p1230_p7 = scmp.ne.s32.totalorder %s75_s25, %s1229_s5  ;;  %p1235_p9 = scmp.lt.s32.totalorder %s1229_s5, %s1229_s5 }
  0x4f   :  { %p1236_p10 = por %p1235_p9, %p1234_p8 }
  0x51   :  { %p1237_p11 = pnand %p1236_p10, %p1230_p7 }
  0x53   :  { %1240 = shalt.err (!%p1237_p11)
}
  0x54   :  { %80 = dma.hbm_to_vmem [thread:$0]  %s1522_s6, 2048, %s75_s25, [#allocation9], %s1276_s28, %s1276_s28, %s1277_s9  }
  0x55   :  { %1263 = dma.done.wait [#allocation3], 256  }
  0x56   :  { %1264 = vsyncadd [#allocation3], 4294967040 }
  0x57   :  { %1265 = dma.done.wait [#allocation6], 3584  }
  0x58   :  { %1266 = vsyncadd [#allocation6], 4294963712 }
  0x59   :  { %1267 = dma.done.wait [#allocation9], 4096  }
  0x5a   :  { %1268 = vsyncadd [#allocation9], 4294963200  ;;  %v1280_v0 = vmov 0.0   ;;  %v101_v1 = vld [vmem:[#allocation5 + $0x8] sm:$0xff]  ;;  %v104_v2 = vld [vmem:[#allocation5 + $0x20] sm:$0xff]  ;;  %vm129_vm0 = vcmask 261120   ;;  %v114_v15 = vlaneseq }
  0x5b   :  { %200 = vmatprep.mubr.f32.mxu1 %v1280_v0  ;;  %v100_v3 = vld [vmem:[#allocation5] sm:$0xff]  ;;  %v960_v4 = vpack.c.bf16 %v104_v2, %v101_v1  ;;  %v103_v5 = vld [vmem:[#allocation5 + $0x18] sm:$0xff]  ;;  %v110_v7 = vld [vmem:[#allocation5 + $0x50] sm:$0xff]  ;;  %s1281_s27 = smov [#allocation11]  }
  0x5c   :  { %v107_v6 = vld [vmem:[#allocation5 + $0x38] sm:$0xff]  ;;  %v962_v8 = vpack.c.bf16 %v103_v5, %v100_v3  ;;  %v106_v10 = vld [vmem:[#allocation5 + $0x30] sm:$0xff]  ;;  %v109_v11 = vld [vmem:[#allocation5 + $0x48] sm:$0xff]  ;;  %v1405_v16 = vshrl.u32 %v114_v15, 7  ;;  %s710_s29 = sshll.u32 %s1281_s27, 4  ;;  %s711_s29 = int_to_ptr.vmem [resolvable:$true] %s710_s29 }
  0x5d   :  { %v964_v9 = vpack.c.bf16 %v110_v7, %v107_v6  ;;  %961 = vmatprep.subr.bf16.mxu1 %v960_v4  ;;  %v966_v12 = vpack.c.bf16 %v109_v11, %v106_v10  ;;  %v98_v13 = vld [vmem:[#allocation2] sm:$0xff]  ;;  %v1400_v14 = vld [vmem:[#allocation2 + $0x8] sm:$0xff]  ;;  %v1416_v25 = vld [vmem:[#allocation8] sm:$0xff]  ;;  %p1246_p13 = scmp.lt.s32.totalorder %s711_s29, %s711_s29 }
  0x5e   :  { %963 = vmatpush1.bf16.msra.mxu1 %v962_v8  ;;  %v116_v17 = vsub.s32 0, %v1405_v16  ;;  %v1411_v18 = vld [vmem:[%s1518_s2] sm:$0x7]  ;;  %v120_v19 = vsub.s32 1, %v1405_v16  ;;  %v1420_v28 = vld [vmem:[#allocation8 + $0x20] sm:$0xff]  ;;  %v1430_v34 = vld [vmem:[#allocation8 + $0x8] sm:$0xff] }
  0x5f   :  { %965 = vmatprep.subr.bf16.mxu1 %v964_v9  ;;  %v1418_v27 = vld [vmem:[#allocation8 + $0x10] sm:$0xff]  ;;  %v1424_v30 = vld [vmem:[#allocation8 + $0x40] sm:$0xff]  ;;  %v1432_v35 = vld [vmem:[#allocation8 + $0x18] sm:$0xff] }
  0x60   :  { %v117_v20 = vrot.slane %v1411_v18, %v116_v17  ;;  %v121_v21 = vrot.slane %v1411_v18, %v120_v19  ;;  %v1422_v29 = vld [vmem:[#allocation8 + $0x30] sm:$0xff]  ;;  %v1428_v32 = vld [vmem:[#allocation8 + $0x60] sm:$0xff]  ;;  %v1437_v40 = vld [vmem:[#allocation8 + $0x28] sm:$0xff] }
  0x61   :  { %v1426_v31 = vld [vmem:[#allocation8 + $0x50] sm:$0xff]  ;;  %v1439_v41 = vld [vmem:[#allocation8 + $0x38] sm:$0xff]  ;;  %v1441_v42 = vld [vmem:[#allocation8 + $0x48] sm:$0xff] }
  0x62   :  { %967 = vmatpush1.bf16.msra.mxu1 %v966_v12  ;;  %v1434_v36 = vld [vmem:[#allocation8 + $0x70] sm:$0xff]  ;;  %v1446_v47 = vld [vmem:[#allocation8 + $0x58] sm:$0xff]  ;;  %v1448_v48 = vld [vmem:[#allocation8 + $0x68] sm:$0xff] }
  0x63   :  { %v1450_v49 = vld [vmem:[#allocation8 + $0x78] sm:$0xff]  ;;  %v102_v6 = vld [vmem:[#allocation5 + $0x10] sm:$0xff]  ;;  %v105_v7 = vld [vmem:[#allocation5 + $0x28] sm:$0xff] }
  0x64   :  { %v108_v8 = vld [vmem:[#allocation5 + $0x40] sm:$0xff]  ;;  %v968_v9 = vpack.c.bf16 %v105_v7, %v102_v6  ;;  %v111_v10 = vld [vmem:[#allocation5 + $0x58] sm:$0xff]  ;;  %v425_v17 = vld [vmem:[#allocation10 + $0x10] sm:$0xff] }
  0x65   :  { %724 = vmatmul.mubr.msk.f32.vlgmr.msra.gmra.mrb[0].mxu1 %vm129_vm0, %v98_v13  ;;  %v972_v11 = vpack.c.bf16 %v111_v10, %v108_v8  ;;  %v423_v12 = vld [vmem:[#allocation10] sm:$0xff]  ;;  %v426_v19 = vld [vmem:[#allocation10 + $0x18] sm:$0xff] }
  0x66   :  { %206 = vmatprep.mubr.f32.mxu1 %v1280_v0  ;;  %969 = vmatprep.subr.bf16.mxu1 %v968_v9 }
  0x67   :  { %971 = vmatpush3.bf16.msra.mxu1 %v968_v9 }
  0x68   :  { %973 = vmatprep.subr.bf16.mxu1 %v972_v11 }
  0x69   :  { %725 = vmatmul.mubr.msk.f32.gmra.mrb[2].mxu1 %vm129_vm0, %v1400_v14 }
  0x6a   :  { %817 = vmatprep.mubr.msk.f32.mxu1 %vm129_vm0, %v98_v13  ;;  %v424_v13 = vld [vmem:[#allocation10 + $0x8] sm:$0xff] }
  0x6b   :  { %v1008_v15 = vpack.c.bf16 %v424_v13, %v423_v12  ;;  %975 = vmatpush3.bf16.msra.mxu1 %v972_v11 }
  0x6d   :  { %1009 = vmatprep.subr.bf16.mxu1 %v1008_v15 }
  0x6e   :  { %818 = vmatmul.mubr.msk.f32.vlgmr.msra.gmra.mrb[4].mxu1 %vm129_vm0, %v1400_v14  ;;  %v337_v14 = vld [vmem:[%s1523_s7 + $0x8] sm:$0xff] }
  0x6f   :  { %1011 = vmatpush3.bf16.msra.mxu1 %v1008_v15 }
 0x138   :  { %v202_v22 = vpop.f32.mrb[0].mxu1 }
 0x139   :  { %v204_v23 = vpop.f32.mrb[1].mxu1  ;;  %v203_v24 = vadd.f32 %v202_v22, %v117_v20  ;;  %v428_v22 = vld [vmem:[#allocation10 + $0x28] sm:$0xff] }
 0x13a   :  { %v205_v26 = vadd.f32 %v204_v23, %v121_v21 }
 0x13b   :  { %852 = vmatprep.mubr.f32.mxu0 %v203_v24  ;;  %v429_v24 = vld [vmem:[#allocation10 + $0x30] sm:$0xff] }
 0x13c   :  { %v208_v33 = vpop.f32.mrb[2].mxu1  ;;  %v304_v39 = vmul.f32 %v1416_v25, %v205_v26  ;;  %v306_v44 = vmul.f32 %v1418_v27, %v205_v26  ;;  %v308_v45 = vmul.f32 %v1420_v28, %v205_v26  ;;  %v310_v46 = vmul.f32 %v1422_v29, %v205_v26 }
 0x13d   :  { %v209_v37 = vadd.f32 %v208_v33, %v117_v20  ;;  %v210_v38 = vpop.f32.mrb[3].mxu1  ;;  %v312_v50 = vmul.f32 %v1424_v30, %v205_v26  ;;  %v314_v51 = vmul.f32 %v1426_v31, %v205_v26  ;;  %v316_v52 = vmul.f32 %v1428_v32, %v205_v26 }
 0x13e   :  { %v211_v43 = vadd.f32 %v210_v38, %v121_v21  ;;  %v318_v53 = vmul.f32 %v1434_v36, %v205_v26  ;;  %v1012_v20 = vpack.c.bf16 %v426_v19, %v425_v17  ;;  %v427_v21 = vld [vmem:[#allocation10 + $0x20] sm:$0xff]  ;;  %v430_v26 = vld [vmem:[#allocation10 + $0x38] sm:$0xff] }
 0x13f   :  { %v1016_v23 = vpack.c.bf16 %v428_v22, %v427_v21  ;;  %v1020_v33 = vpack.c.bf16 %v430_v26, %v429_v24  ;;  %v597_v26 = vld [vmem:[#allocation7 + $0x20] sm:$0xff] }
 0x140   :  { %v305_v54 = vmul.f32 %v1430_v34, %v211_v43  ;;  %v307_v55 = vmul.f32 %v1432_v35, %v211_v43  ;;  %v309_v56 = vmul.f32 %v1437_v40, %v211_v43  ;;  %v311_v57 = vmul.f32 %v1439_v41, %v211_v43  ;;  %1013 = vmatprep.subr.bf16.mxu1 %v1012_v20 }
 0x141   :  { %v313_v58 = vmul.f32 %v1441_v42, %v211_v43  ;;  %v315_v59 = vmul.f32 %v1446_v47, %v211_v43  ;;  %v317_v60 = vmul.f32 %v1448_v48, %v211_v43  ;;  %v319_v61 = vmul.f32 %v1450_v49, %v211_v43  ;;  %1015 = vmatpush3.bf16.msra.mxu1 %v1012_v20 }
 0x142   :  { %v976_v62 = vpack.c.bf16 %v305_v54, %v304_v39  ;;  %v980_v63 = vpack.c.bf16 %v307_v55, %v306_v44  ;;  %v984_v0 = vpack.c.bf16 %v309_v56, %v308_v45  ;;  %v988_v1 = vpack.c.bf16 %v311_v57, %v310_v46  ;;  %1017 = vmatprep.subr.bf16.mxu1 %v1016_v23  ;;  %v431_v45 = vld [vmem:[#allocation10 + $0x40] sm:$0xff]  ;;  %v432_v46 = vld [vmem:[#allocation10 + $0x48] sm:$0xff]  ;;  %v437_v56 = vld [vmem:[#allocation10 + $0x70] sm:$0xff] }
 0x143   :  { %v992_v2 = vpack.c.bf16 %v313_v58, %v312_v50  ;;  %v996_v3 = vpack.c.bf16 %v315_v59, %v314_v51  ;;  %v1000_v4 = vpack.c.bf16 %v317_v60, %v316_v52  ;;  %v1004_v5 = vpack.c.bf16 %v319_v61, %v318_v53  ;;  %v433_v51 = vld [vmem:[#allocation10 + $0x50] sm:$0xff]  ;;  %v434_v52 = vld [vmem:[#allocation10 + $0x58] sm:$0xff]  ;;  %v435_v54 = vld [vmem:[#allocation10 + $0x60] sm:$0xff] }
 0x144   :  { %977 = vmatprep.subr.bf16.mxu0 %v976_v62  ;;  %v1024_v50 = vpack.c.bf16 %v432_v46, %v431_v45  ;;  %v1028_v53 = vpack.c.bf16 %v434_v52, %v433_v51  ;;  %v436_v55 = vld [vmem:[#allocation10 + $0x68] sm:$0xff]  ;;  %v438_v58 = vld [vmem:[#allocation10 + $0x78] sm:$0xff]  ;;  %v124_v60 = vsub.s32 2, %v1405_v16  ;;  %v603_v46 = vld [vmem:[#allocation7 + $0x50] sm:$0xff] }
 0x145   :  { %979 = vmatpush3.bf16.xpose.msra.mxu0 %v976_v62  ;;  %1019 = vmatpush3.bf16.msra.mxu1 %v1016_v23  ;;  %v1032_v57 = vpack.c.bf16 %v436_v55, %v435_v54  ;;  %v1036_v59 = vpack.c.bf16 %v438_v58, %v437_v56  ;;  %v819_v62 = vpop.f32.mrb[4].mxu1  ;;  %v596_v23 = vld [vmem:[#allocation7 + $0x18] sm:$0xff]  ;;  %v605_v52 = vld [vmem:[#allocation7 + $0x60] sm:$0xff]  ;;  %v607_v55 = vld [vmem:[#allocation7 + $0x70] sm:$0xff] }
 0x146   :  { %981 = vmatprep.subr.bf16.mxu0 %v980_v63  ;;  %1021 = vmatprep.subr.bf16.mxu1 %v1020_v33  ;;  %v125_v61 = vrot.slane %v1411_v18, %v124_v60  ;;  %v608_v56 = vld [vmem:[#allocation7 + $0x78] sm:$0xff] }
 0x149   :  { %1023 = vmatpush3.bf16.msra.mxu1 %v1020_v33  ;;  %v598_v33 = vld [vmem:[#allocation7 + $0x28] sm:$0xff] }
 0x14a   :  { %1025 = vmatprep.subr.bf16.mxu1 %v1024_v50 }
 0x14d   :  { %983 = vmatpush3.bf16.xpose.msra.mxu0 %v980_v63  ;;  %1027 = vmatpush3.bf16.msra.mxu1 %v1024_v50  ;;  %v285_v63 = vadd.f32 %v819_v62, %v125_v61  ;;  %v604_v50 = vld [vmem:[#allocation7 + $0x58] sm:$0xff] }
 0x14e   :  { %985 = vmatprep.subr.bf16.mxu0 %v984_v0  ;;  %1029 = vmatprep.subr.bf16.mxu1 %v1028_v53  ;;  %v1092_v51 = vpack.c.bf16 %v604_v50, %v603_v46 }
 0x14f   :  { %v329_v9 = vmul.f32 %v1441_v42, %v285_v63 }
 0x151   :  { %1031 = vmatpush3.bf16.msra.mxu1 %v1028_v53  ;;  %v606_v53 = vld [vmem:[#allocation7 + $0x68] sm:$0xff] }
 0x152   :  { %1033 = vmatprep.subr.bf16.mxu1 %v1032_v57  ;;  %v1096_v54 = vpack.c.bf16 %v606_v53, %v605_v52 }
 0x155   :  { %987 = vmatpush3.bf16.xpose.msra.mxu0 %v984_v0  ;;  %1035 = vmatpush3.bf16.msra.mxu1 %v1032_v57  ;;  %v279_v0 = vpop.f32.mrb[5].mxu1  ;;  %v1100_v57 = vpack.c.bf16 %v608_v56, %v607_v55 }
 0x156   :  { %989 = vmatprep.subr.bf16.mxu0 %v988_v1  ;;  %1037 = vmatprep.subr.bf16.mxu1 %v1036_v59 }
 0x159   :  { %1039 = vmatpush3.bf16.msra.mxu1 %v1036_v59 }
 0x15d   :  { %991 = vmatpush3.bf16.xpose.msra.mxu0 %v988_v1  ;;  %v280_v1 = vadd.f32 %v279_v0, %v125_v61 }
 0x15e   :  { %993 = vmatprep.subr.bf16.mxu0 %v992_v2 }
 0x15f   :  { %v320_v6 = vmul.f32 %v1416_v25, %v280_v1  ;;  %v322_v7 = vmul.f32 %v1418_v27, %v280_v1  ;;  %v324_v16 = vmul.f32 %v1420_v28, %v280_v1  ;;  %v326_v18 = vmul.f32 %v1422_v29, %v280_v1 }
 0x160   :  { %v328_v8 = vmul.f32 %v1424_v30, %v280_v1  ;;  %v332_v27 = vmul.f32 %v1428_v32, %v280_v1  ;;  %v333_v28 = vmul.f32 %v1448_v48, %v285_v63  ;;  %v334_v29 = vmul.f32 %v1434_v36, %v280_v1  ;;  %v593_v36 = vld [vmem:[#allocation7] sm:$0xff]  ;;  %v594_v48 = vld [vmem:[#allocation7 + $0x8] sm:$0xff] }
 0x161   :  { %v335_v30 = vmul.f32 %v1450_v49, %v285_v63  ;;  %v595_v49 = vld [vmem:[#allocation7 + $0x10] sm:$0xff]  ;;  %v1072_v22 = vpack.c.bf16 %v594_v48, %v593_v36 }
 0x162   :  { %v1056_v12 = vpack.c.bf16 %v329_v9, %v328_v8  ;;  %v1064_v42 = vpack.c.bf16 %v333_v28, %v332_v27  ;;  %v1076_v24 = vpack.c.bf16 %v596_v23, %v595_v49 }
 0x163   :  { %v1068_v13 = vpack.c.bf16 %v335_v30, %v334_v29 }
 0x165   :  { %995 = vmatpush3.bf16.xpose.msra.mxu0 %v992_v2  ;;  %v321_v2 = vmul.f32 %v1430_v34, %v285_v63  ;;  %v330_v34 = vmul.f32 %v1426_v31, %v280_v1 }
 0x166   :  { %997 = vmatprep.subr.bf16.mxu0 %v996_v3 }
 0x167   :  { %v1040_v10 = vpack.c.bf16 %v321_v2, %v320_v6  ;;  %v728_v2 = vld [vmem:[%s1520_s4] ss:$0 sm:$0xff]  ;;  %s1241_s4 = scalar_lea.vmem %s711_s29, 256 }
 0x168   :  { %p1242_p12 = scmp.ne.s32.totalorder %s711_s29, %s1241_s4  ;;  %p1247_p0 = scmp.lt.s32.totalorder %s1241_s4, %s1241_s4 }
 0x169   :  { %1041 = vmatprep.subr.bf16.mxu1 %v1040_v10 }
 0x16a   :  { %p1248_p1 = por %p1247_p0, %p1246_p13 }
 0x16c   :  { %p1249_p2 = pnand %p1248_p1, %p1242_p12 }
 0x16d   :  { %999 = vmatpush3.bf16.xpose.msra.mxu0 %v996_v3  ;;  %v323_v3 = vmul.f32 %v1432_v35, %v285_v63  ;;  %v331_v35 = vmul.f32 %v1446_v47, %v285_v63 }
 0x16e   :  { %1001 = vmatprep.subr.bf16.mxu0 %v1000_v4 }
 0x16f   :  { %v1060_v25 = vpack.c.bf16 %v331_v35, %v330_v34 }
 0x175   :  { %1003 = vmatpush3.bf16.xpose.msra.mxu0 %v1000_v4  ;;  %v325_v4 = vmul.f32 %v1437_v40, %v285_v63  ;;  %v1044_v40 = vpack.c.bf16 %v323_v3, %v322_v7 }
 0x176   :  { %1005 = vmatprep.subr.bf16.mxu0 %v1004_v5 }
 0x177   :  { %v1048_v11 = vpack.c.bf16 %v325_v4, %v324_v16 }
 0x17d   :  { %1007 = vmatpush3.bf16.xpose.msra.mxu0 %v1004_v5  ;;  %v327_v5 = vmul.f32 %v1439_v41, %v285_v63 }
 0x17e   :  { %1073 = vmatprep.subr.bf16.mxu0 %v1072_v22 }
 0x17f   :  { %v1052_v41 = vpack.c.bf16 %v327_v5, %v326_v18 }
 0x184   :  { %853 = vmatmul.mubr.f32.vlgmr.msra.gmra.mrb[0].mxu0 %v209_v37  ;;  %v336_v37 = vld [vmem:[%s1523_s7] sm:$0xff] }
 0x185   :  { %1075 = vmatpush3.bf16.msra.mxu0 %v1072_v22 }
 0x186   :  { %1077 = vmatprep.subr.bf16.mxu0 %v1076_v24 }
 0x189   :  { %1079 = vmatpush3.bf16.msra.mxu0 %v1076_v24 }
 0x257   :  { %v854_v38 = vpop.f32.mrb[0].mxu0 }
 0x258   :  { %v404_v39 = vpop.f32.mrb[1].mxu0  ;;  %v410_v44 = vadd.f32 %v854_v38, %v337_v14  ;;  %v599_v38 = vld [vmem:[#allocation7 + $0x30] sm:$0xff]  ;;  %v601_v14 = vld [vmem:[#allocation7 + $0x40] sm:$0xff] }
 0x259   :  { %v405_v43 = vadd.f32 %v404_v39, %v336_v37  ;;  %v1080_v37 = vpack.c.bf16 %v598_v33, %v597_v26  ;;  %v600_v39 = vld [vmem:[#allocation7 + $0x38] sm:$0xff] }
 0x25b   :  { %413 = vmax.xlane.f32.xlu0 %v405_v43  ;;  %1081 = vmatprep.subr.bf16.mxu0 %v1080_v37 }
 0x25c   :  { %1083 = vmatpush3.bf16.msra.mxu0 %v1080_v37 }
 0x25f   :  { %415 = vmax.xlane.f32.xlu0 %v410_v44 }
 0x2e8   :  { %v414_v31 = vpop.xlane.xlu0 %413 }
 0x2e9   :  { %v417_v15 = vsub.f32 %v405_v43, %v414_v31  ;;  %v1084_v43 = vpack.c.bf16 %v600_v39, %v599_v38 }
 0x2eb   :  { %v419_v47 = vmul.f32 1.442695, %v417_v15  ;;  %1085 = vmatprep.subr.bf16.mxu0 %v1084_v43 }
 0x2ec   :  { %v416_v17 = vpop.xlane.xlu0 %415  ;;  %1087 = vmatpush3.bf16.msra.mxu0 %v1084_v43 }
 0x2ed   :  { %1115 = vpow2.f32 %v419_v47  ;;  %v418_v19 = vsub.f32 %v410_v44, %v416_v17  ;;  %v602_v44 = vld [vmem:[#allocation7 + $0x48] sm:$0xff] }
 0x2ee   :  { %v1088_v45 = vpack.c.bf16 %v602_v44, %v601_v14 }
 0x2ef   :  { %v421_v20 = vmul.f32 1.442695, %v418_v19 }
 0x2f0   :  { %1089 = vmatprep.subr.bf16.mxu0 %v1088_v45 }
 0x2f1   :  { %1117 = vpow2.f32 %v421_v20  ;;  %1091 = vmatpush3.bf16.msra.mxu0 %v1088_v45 }
 0x2f2   :  { %1093 = vmatprep.subr.bf16.mxu0 %v1092_v51 }
 0x2f5   :  { %1095 = vmatpush3.bf16.msra.mxu0 %v1092_v51 }
 0x2f6   :  { %1097 = vmatprep.subr.bf16.mxu0 %v1096_v54 }
 0x2f7   :  { %v1490_v21 = vpop.eup %1115 }
 0x2f8   :  { %887 = vmatprep.mubr.f32.mxu1 %v1490_v21 }
 0x2f9   :  { %1099 = vmatpush3.bf16.msra.mxu0 %v1096_v54 }
 0x2fa   :  { %1101 = vmatprep.subr.bf16.mxu0 %v1100_v57 }
 0x2fb   :  { %v1493_v32 = vpop.eup %1117 }
 0x2fc   :  { %888 = vmatmul.mubr.f32.vlgmr.msra.gmra.mrb[6].mxu1 %v1493_v32 }
 0x2fd   :  { %1043 = vmatpush3.bf16.msra.mxu1 %v1040_v10  ;;  %1103 = vmatpush3.bf16.msra.mxu0 %v1100_v57 }
 0x2fe   :  { %1045 = vmatprep.subr.bf16.mxu1 %v1044_v40 }
 0x301   :  { %1047 = vmatpush3.bf16.msra.mxu1 %v1044_v40 }
 0x302   :  { %1049 = vmatprep.subr.bf16.mxu1 %v1048_v11 }
 0x305   :  { %1051 = vmatpush3.bf16.msra.mxu1 %v1048_v11 }
 0x306   :  { %1053 = vmatprep.subr.bf16.mxu1 %v1052_v41 }
 0x309   :  { %1055 = vmatpush3.bf16.msra.mxu1 %v1052_v41 }
 0x30a   :  { %1057 = vmatprep.subr.bf16.mxu1 %v1056_v12 }
 0x30d   :  { %1059 = vmatpush3.bf16.msra.mxu1 %v1056_v12 }
 0x30e   :  { %1061 = vmatprep.subr.bf16.mxu1 %v1060_v25 }
 0x311   :  { %1063 = vmatpush3.bf16.msra.mxu1 %v1060_v25 }
 0x312   :  { %1065 = vmatprep.subr.bf16.mxu1 %v1064_v42 }
 0x315   :  { %1067 = vmatpush3.bf16.msra.mxu1 %v1064_v42 }
 0x316   :  { %1069 = vmatprep.subr.bf16.mxu1 %v1068_v13 }
 0x319   :  { %1071 = vmatpush3.bf16.msra.mxu1 %v1068_v13 }
 0x3cf   :  { %v889_v58 = vpop.f32.mrb[6].mxu1 }
 0x3d0   :  { %1119 = vrcp.f32 %v889_v58  ;;  %v505_v59 = vpop.f32.mrb[7].mxu1 }
 0x3d1   :  { %1121 = vrcp.f32 %v505_v59 }
 0x3da   :  { %v1120_v60 = vpop.eup %1119 }
 0x3db   :  { %v1122_v61 = vpop.eup %1121  ;;  %v517_v63 = vmul.f32 %v1120_v60, %v1493_v32 }
 0x3dc   :  { %v515_v62 = vmul.f32 %v1122_v61, %v1490_v21 }
 0x3de   :  { %922 = vmatprep.mubr.f32.mxu1 %v515_v62 }
 0x3df   :  { %923 = vmatmul.mubr.f32.vlgmr.msra.gmra.mrb[8].mxu1 %v517_v63 }
 0x4b2   :  { %v924_v0 = vpop.f32.mrb[8].mxu1 }
 0x4b3   :  { %v584_v1 = vpop.f32.mrb[9].mxu1 }
 0x4b4   :  { %957 = vmatprep.mubr.f32.mxu0 %v584_v1 }
 0x4b5   :  { %958 = vmatmul.mubr.f32.vlgmr.msra.gmra.mrb[2].mxu0 %v924_v0 }
 0x588   :  { %v959_v3 = vpop.f32.mrb[2].mxu0 }
 0x589   :  { %v688_v4 = vadd.f32 %v959_v3, %v728_v2  ;;  %v682_v5 = vpop.f32.mrb[3].mxu0 }
 0x58a   :  { %v683_v6 = vadd.f32 %v728_v2, %v682_v5 }
 0x58b   :  { %v730_v7 = vmul.f32 -1.442695, %v688_v4 }
 0x58c   :  { %v729_v16 = vmul.f32 -1.442695, %v683_v6 }
 0x58d   :  { %1123 = vpow2.f32 %v730_v7 }
 0x58e   :  { %1125 = vpow2.f32 %v729_v16 }
 0x597   :  { %v1124_v18 = vpop.eup %1123 }
 0x598   :  { %v1126_v8 = vpop.eup %1125  ;;  %v698_v9 = vadd.f32 1.0, %v1124_v18 }
 0x599   :  { %v697_v34 = vadd.f32 1.0, %v1126_v8 }
 0x59a   :  { %1127 = vrcp.f32 %v698_v9 }
 0x59b   :  { %1129 = vrcp.f32 %v697_v34 }
 0x5a4   :  { %v1128_v35 = vpop.eup %1127 }
 0x5a5   :  { %v1130_v10 = vpop.eup %1129  ;;  %704 = vst [vmem:[#allocation11 + $0x8] sm:$0xff] %v1128_v35 }
 0x5a6   :  { %703 = vst [vmem:[#allocation11] sm:$0xff] %v1130_v10 }
 0x5a7   :  { %1252 = shalt.err (!%p1249_p2)
}
 0x5a8   :  { %s1253_s10 = scalar_lea.hbm %s1524_s8, 256 }
 0x5a9   :  { %p1254_p3 = scmp.ne.s32.totalorder %s1524_s8, %s1253_s10  ;;  %p1257_p4 = scmp.lt.u32.totalorder %s1253_s10, %s1524_s8 }
 0x5ab   :  { %p1259_p5 = pnand %p1257_p4, %p1254_p3 }
 0x5ad   :  { %1262 = shalt.err (!%p1259_p5)
}
 0x5ae   :  { %716 = dma.vmem_to_hbm [thread:$0]  %s711_s29, 256, %s1524_s8, [#allocation4], %s1276_s28, %s1276_s28, %s1277_s9  }
 0x5af   :  { %1269 = dma.done.wait [#allocation4], 256  }
 0x5b0   :  { %1270 = vsyncadd [#allocation4], 4294967040 }
 0x5b1   :  { %720 = vsyncpa [#allocation3], 1 }
 0x5b2   :  { %721 = vsyncpa [#allocation6], 1 }
 0x5b3   :  { %722 = vsyncpa [#allocation9], 1 }
 0x5b4   :  { %723 = vsyncpa [#allocation4], 1 }

</bundles_post_ra>
